<compile_context>
chip_gen: v7x
topology: tpu7x:2x2x1
jax: 0.10.0
libtpu: 0.0.40
codegen_flags: <defaults>
</compile_context>

<pallas_src>
import functools
import math

import jax
import jax.numpy as jnp
from jax.experimental import pallas as pl
from jax.experimental.pallas import tpu as pltpu


# ----------------------------- fused Pallas kernel -------------------------- #

def _make_rnn_net_kernel(T, B, H, num_layers, bidirectional):
    """Builds a kernel that runs all RNN layers + the FC head in one call.

    Ref order (all full arrays in VMEM, no grid):
      x2d (T*B, D_in),
      per layer: wih_cat (D_l, ndirs*H), whh_fwd (H, H), [whh_bwd (H, H)],
                 bias_cat (1, ndirs*H),
      fc_w_t (ndirs*H, C), fc_b (1, C),
      out (T*B, C),
      hs_scratch (T*B, ndirs*H)   [VMEM scratch]
    """
    num_dirs = 2 if bidirectional else 1
    per_layer = 4 if bidirectional else 3

    def kernel(*refs):
        hs_ref = refs[-1]                # VMEM scratch (T*B, ndirs*H)
        out_ref = refs[-2]               # (T*B, C)
        in_refs = refs[:-2]

        x_ref = in_refs[0]
        idx = 1
        layer_refs = []
        for _ in range(num_layers):
            layer_refs.append(in_refs[idx:idx + per_layer])
            idx += per_layer
        wfc_ref, bfc_ref = in_refs[idx], in_refs[idx + 1]

        cur = x_ref[...]                                   # (T*B, D_in) value

        for layer in range(num_layers):
            if bidirectional:
                wih_ref, whh_f_ref, whh_b_ref, b_ref = layer_refs[layer]
            else:
                wih_ref, whh_f_ref, b_ref = layer_refs[layer]
                whh_b_ref = None

            # Hoisted, non-recurrent projection for ALL timesteps (and both
            # directions, packed column-wise) as one MXU GEMM; bias added once.
            pre = (jnp.dot(cur, wih_ref[...],
                           preferred_element_type=jnp.float32)
                   + b_ref[...])                           # (T*B, ndirs*H)

            def run_direction(pre_dir, whh, col0, reverse):
                # Fully unrolled recurrence (T is small & static): per step
                # only the tiny (B,H)@(H,H) matmul + tanh is serial.
                h = jnp.zeros((B, H), jnp.float32)
                steps = range(T - 1, -1, -1) if reverse else range(T)
                for t in steps:
                    p_t = pre_dir[t * B:(t + 1) * B, :]
                    h = jnp.tanh(
                        p_t + jnp.dot(h, whh,
                                      preferred_element_type=jnp.float32))
                    hs_ref[t * B:(t + 1) * B, col0:col0 + H] = h

            run_direction(pre[:, 0:H], whh_f_ref[...], 0, reverse=False)
            if bidirectional:
                run_direction(pre[:, H:2 * H], whh_b_ref[...], H, reverse=True)

            cur = hs_ref[...]                              # (T*B, ndirs*H)

        # Fused FC head; single HBM writeback of the logits slab.
        out_ref[...] = (jnp.dot(cur, wfc_ref[...],
                                preferred_element_type=jnp.float32)
                        + bfc_ref[...]).astype(out_ref.dtype)

    return kernel


# --------------------------------- wrappers --------------------------------- #

def init_params(key, input_size, hidden_size, num_layers, bidirectional,
                num_classes):
    """Synthetic params mirroring nn.RNN / nn.Linear, pre-packed for the kernel:
    per layer: (W_ih^T [cat over dirs], W_hh_fwd^T, [W_hh_bwd^T], (b_ih+b_hh) [cat]).
    """
    num_dirs = 2 if bidirectional else 1
    k = 1.0 / math.sqrt(hidden_size)

    def uni(key, shape, scale):
        return jax.random.uniform(key, shape, jnp.float32,
                                  minval=-scale, maxval=scale)

    layers = []
    for layer in range(num_layers):
        d_in = input_size if layer == 0 else hidden_size * num_dirs
        wih_t, whh_t, biases = [], [], []
        for _ in range(num_dirs):
            key, k1, k2, k3, k4 = jax.random.split(key, 5)
            w_ih = uni(k1, (hidden_size, d_in), k)          # torch layout (H, Din)
            w_hh = uni(k2, (hidden_size, hidden_size), k)
            b_ih = uni(k3, (hidden_size,), k)
            b_hh = uni(k4, (hidden_size,), k)
            wih_t.append(jnp.transpose(w_ih))               # (Din, H)
            whh_t.append(jnp.transpose(w_hh))               # (H, H)
            biases.append((b_ih + b_hh).reshape(1, hidden_size))
        if bidirectional:
            layers.append((jnp.concatenate(wih_t, axis=1),  # (Din, 2H)
                           whh_t[0], whh_t[1],
                           jnp.concatenate(biases, axis=1)))  # (1, 2H)
        else:
            layers.append((wih_t[0], whh_t[0], biases[0]))

    key, k5, k6 = jax.random.split(key, 3)
    fc_in = hidden_size * num_dirs
    kf = 1.0 / math.sqrt(fc_in)
    w_fc = uni(k5, (num_classes, fc_in), kf)
    b_fc = uni(k6, (num_classes,), kf)
    return {"layers": layers, "fc_w_t": jnp.transpose(w_fc), "fc_b": b_fc}


@functools.partial(jax.jit, static_argnames=("hidden_size", "num_layers",
                                             "bidirectional", "num_classes"))
def rnn_forward(x_btd, params, *, hidden_size, num_layers, bidirectional,
                num_classes):
    """x_btd: (B, T, D) -> logits (B, T, num_classes) (PyTorch batch_first)."""
    B, T, D = x_btd.shape
    num_dirs = 2 if bidirectional else 1
    # Time-major flat rows (row index = t*B + b); one cheap XLA transpose.
    x2d = jnp.transpose(x_btd, (1, 0, 2)).reshape(T * B, D)

    inputs = [x2d]
    for layer_w in params["layers"]:
        inputs.extend(layer_w)
    inputs.append(params["fc_w_t"])
    inputs.append(params["fc_b"].reshape(1, num_classes))

    kernel = _make_rnn_net_kernel(T, B, hidden_size, num_layers, bidirectional)
    out2d = pl.pallas_call(
        kernel,
        out_shape=jax.ShapeDtypeStruct((T * B, num_classes), jnp.float32),
        scratch_shapes=[pltpu.VMEM((T * B, num_dirs * hidden_size),
                                   jnp.float32)],
    )(*inputs)
    return out2d.reshape(T, B, num_classes).transpose(1, 0, 2)


def rnn_forward_reference(x_btd, params, *, hidden_size, num_layers,
                          bidirectional):
    """Pure-JAX reference matching torch nn.RNN(tanh, batch_first) + Linear."""
    hp = jax.lax.Precision.HIGHEST
    B, T, _ = x_btd.shape
    H = hidden_size
    x = x_btd
    for layer in range(num_layers):
        lw = params["layers"][layer]
        if bidirectional:
            wih_cat, whh_f, whh_b, b_cat = lw
            dirs = [(wih_cat[:, :H], whh_f, b_cat[:, :H], False),
                    (wih_cat[:, H:], whh_b, b_cat[:, H:], True)]
        else:
            wih, whh, b = lw
            dirs = [(wih, whh, b, False)]
        outs = []
        for wih, whh, b, reverse in dirs:
            h = jnp.zeros((B, H), jnp.float32)
            hs = [None] * T
            steps = range(T - 1, -1, -1) if reverse else range(T)
            for t in steps:
                h = jnp.tanh(jnp.dot(x[:, t, :], wih, precision=hp) + b
                             + jnp.dot(h, whh, precision=hp))
                hs[t] = h
            outs.append(jnp.stack(hs, axis=1))               # (B, T, H)
        x = jnp.concatenate(outs, axis=-1) if bidirectional else outs[0]
    return (jnp.einsum("bth,hc->btc", x, params["fc_w_t"], precision=hp)
            + params["fc_b"])


# ----------------------------------- main ----------------------------------- #

if __name__ == "__main__":
    # Small shapes consistent with the module (resnet18/34 branch):
    #   input_size=512, batch=2, seq=8, hidden=32, layers=2, unidirectional, 2 classes.
    B, T, D = 2, 8, 512
    HIDDEN, LAYERS, BIDIR, CLASSES = 32, 2, False, 2

    key = jax.random.PRNGKey(0)
    key, kx, kp = jax.random.split(key, 3)
    x = jax.random.normal(kx, (B, T, D), dtype=jnp.float32)
    params = init_params(kp, D, HIDDEN, LAYERS, BIDIR, CLASSES)

    out = rnn_forward(x, params, hidden_size=HIDDEN, num_layers=LAYERS,
                      bidirectional=BIDIR, num_classes=CLASSES)
    out = jax.block_until_ready(out)
    assert out.shape == (B, T, CLASSES), out.shape

    ref = rnn_forward_reference(x, params, hidden_size=HIDDEN,
                                num_layers=LAYERS, bidirectional=BIDIR)
    ref = jax.block_until_ready(ref)
    max_err = float(jnp.max(jnp.abs(out - ref)))
    assert jnp.allclose(out, ref, atol=2e-3, rtol=2e-3), max_err

    print("KERNEL_OK")
</pallas_src>

<mosaic_0001>
module attributes {stable_mosaic.version = 11 : i64} {
  func.func @kernel(%arg0: memref<16x512xf32, #tpu.memory_space<vmem>>, %arg1: memref<512x32xf32, #tpu.memory_space<vmem>>, %arg2: memref<32x32xf32, #tpu.memory_space<vmem>>, %arg3: memref<1x32xf32, #tpu.memory_space<vmem>>, %arg4: memref<32x32xf32, #tpu.memory_space<vmem>>, %arg5: memref<32x32xf32, #tpu.memory_space<vmem>>, %arg6: memref<1x32xf32, #tpu.memory_space<vmem>>, %arg7: memref<32x2xf32, #tpu.memory_space<vmem>>, %arg8: memref<1x2xf32, #tpu.memory_space<vmem>>, %arg9: memref<16x2xf32, #tpu.memory_space<vmem>>, %arg10: memref<16x32xf32, #tpu.memory_space<vmem>>) attributes {dimension_semantics = [], scalar_prefetch = 0 : i64, scratch_operands = 1 : i64, tpu.core_type = #tpu.core_type<tc>} {
    %c0 = arith.constant 0 : index
    %c0_0 = arith.constant 0 : index
    %0 = vector.load %arg0[%c0, %c0_0] : memref<16x512xf32, #tpu.memory_space<vmem>>, vector<16x512xf32>
    %c0_1 = arith.constant 0 : index
    %c0_2 = arith.constant 0 : index
    %1 = vector.load %arg1[%c0_1, %c0_2] : memref<512x32xf32, #tpu.memory_space<vmem>>, vector<512x32xf32>
    %cst = arith.constant dense<0.000000e+00> : vector<16x32xf32>
    %2 = tpu.matmul %0, %1, %cst {dimension_numbers = #tpu.dot_dimension_numbers<[1], [0], [0], [1], [0, 0, 1, 1], [], []>} : vector<16x512xf32>, vector<512x32xf32>, vector<16x32xf32> -> vector<16x32xf32>
    %c0_3 = arith.constant 0 : index
    %c0_4 = arith.constant 0 : index
    %3 = vector.load %arg3[%c0_3, %c0_4] : memref<1x32xf32, #tpu.memory_space<vmem>>, vector<1x32xf32>
    %4 = vector.broadcast %3 : vector<1x32xf32> to vector<16x32xf32>
    %5 = arith.addf %2, %4 : vector<16x32xf32>
    %c0_5 = arith.constant 0 : index
    %c0_6 = arith.constant 0 : index
    %6 = vector.load %arg2[%c0_5, %c0_6] : memref<32x32xf32, #tpu.memory_space<vmem>>, vector<32x32xf32>
    %cst_7 = arith.constant 0.000000e+00 : f32
    %7 = vector.broadcast %cst_7 : f32 to vector<2x32xf32>
    %8 = vector.extract_strided_slice %5 {offsets = [0, 0], sizes = [2, 32], strides = [1, 1]} : vector<16x32xf32> to vector<2x32xf32>
    %cst_8 = arith.constant dense<0.000000e+00> : vector<2x32xf32>
    %9 = tpu.matmul %7, %6, %cst_8 {dimension_numbers = #tpu.dot_dimension_numbers<[1], [0], [0], [1], [0, 0, 1, 1], [], []>} : vector<2x32xf32>, vector<32x32xf32>, vector<2x32xf32> -> vector<2x32xf32>
    %10 = arith.addf %8, %9 : vector<2x32xf32>
    %11 = math.tanh %10 : vector<2x32xf32>
    %c0_9 = arith.constant 0 : index
    %c0_10 = arith.constant 0 : index
    %12 = vector.load %arg10[%c0_9, %c0_10] : memref<16x32xf32, #tpu.memory_space<vmem>>, vector<2x32xf32>
    tpu.vector_store %arg10[%c0_9, %c0_10], %11 {strides = array<i32>} : memref<16x32xf32, #tpu.memory_space<vmem>>, vector<2x32xf32>,
    %13 = vector.extract_strided_slice %5 {offsets = [2, 0], sizes = [2, 32], strides = [1, 1]} : vector<16x32xf32> to vector<2x32xf32>
    %cst_11 = arith.constant dense<0.000000e+00> : vector<2x32xf32>
    %14 = tpu.matmul %11, %6, %cst_11 {dimension_numbers = #tpu.dot_dimension_numbers<[1], [0], [0], [1], [0, 0, 1, 1], [], []>} : vector<2x32xf32>, vector<32x32xf32>, vector<2x32xf32> -> vector<2x32xf32>
    %15 = arith.addf %13, %14 : vector<2x32xf32>
    %16 = math.tanh %15 : vector<2x32xf32>
    %c2 = arith.constant 2 : index
    %c0_12 = arith.constant 0 : index
    %17 = vector.load %arg10[%c2, %c0_12] : memref<16x32xf32, #tpu.memory_space<vmem>>, vector<2x32xf32>
    tpu.vector_store %arg10[%c2, %c0_12], %16 {strides = array<i32>} : memref<16x32xf32, #tpu.memory_space<vmem>>, vector<2x32xf32>,
    %18 = vector.extract_strided_slice %5 {offsets = [4, 0], sizes = [2, 32], strides = [1, 1]} : vector<16x32xf32> to vector<2x32xf32>
    %cst_13 = arith.constant dense<0.000000e+00> : vector<2x32xf32>
    %19 = tpu.matmul %16, %6, %cst_13 {dimension_numbers = #tpu.dot_dimension_numbers<[1], [0], [0], [1], [0, 0, 1, 1], [], []>} : vector<2x32xf32>, vector<32x32xf32>, vector<2x32xf32> -> vector<2x32xf32>
    %20 = arith.addf %18, %19 : vector<2x32xf32>
    %21 = math.tanh %20 : vector<2x32xf32>
    %c4 = arith.constant 4 : index
    %c0_14 = arith.constant 0 : index
    %22 = vector.load %arg10[%c4, %c0_14] : memref<16x32xf32, #tpu.memory_space<vmem>>, vector<2x32xf32>
    tpu.vector_store %arg10[%c4, %c0_14], %21 {strides = array<i32>} : memref<16x32xf32, #tpu.memory_space<vmem>>, vector<2x32xf32>,
    %23 = vector.extract_strided_slice %5 {offsets = [6, 0], sizes = [2, 32], strides = [1, 1]} : vector<16x32xf32> to vector<2x32xf32>
    %cst_15 = arith.constant dense<0.000000e+00> : vector<2x32xf32>
    %24 = tpu.matmul %21, %6, %cst_15 {dimension_numbers = #tpu.dot_dimension_numbers<[1], [0], [0], [1], [0, 0, 1, 1], [], []>} : vector<2x32xf32>, vector<32x32xf32>, vector<2x32xf32> -> vector<2x32xf32>
    %25 = arith.addf %23, %24 : vector<2x32xf32>
    %26 = math.tanh %25 : vector<2x32xf32>
    %c6 = arith.constant 6 : index
    %c0_16 = arith.constant 0 : index
    %27 = vector.load %arg10[%c6, %c0_16] : memref<16x32xf32, #tpu.memory_space<vmem>>, vector<2x32xf32>
    tpu.vector_store %arg10[%c6, %c0_16], %26 {strides = array<i32>} : memref<16x32xf32, #tpu.memory_space<vmem>>, vector<2x32xf32>,
    %28 = vector.extract_strided_slice %5 {offsets = [8, 0], sizes = [2, 32], strides = [1, 1]} : vector<16x32xf32> to vector<2x32xf32>
    %cst_17 = arith.constant dense<0.000000e+00> : vector<2x32xf32>
    %29 = tpu.matmul %26, %6, %cst_17 {dimension_numbers = #tpu.dot_dimension_numbers<[1], [0], [0], [1], [0, 0, 1, 1], [], []>} : vector<2x32xf32>, vector<32x32xf32>, vector<2x32xf32> -> vector<2x32xf32>
    %30 = arith.addf %28, %29 : vector<2x32xf32>
    %31 = math.tanh %30 : vector<2x32xf32>
    %c8 = arith.constant 8 : index
    %c0_18 = arith.constant 0 : index
    %32 = vector.load %arg10[%c8, %c0_18] : memref<16x32xf32, #tpu.memory_space<vmem>>, vector<2x32xf32>
    tpu.vector_store %arg10[%c8, %c0_18], %31 {strides = array<i32>} : memref<16x32xf32, #tpu.memory_space<vmem>>, vector<2x32xf32>,
    %33 = vector.extract_strided_slice %5 {offsets = [10, 0], sizes = [2, 32], strides = [1, 1]} : vector<16x32xf32> to vector<2x32xf32>
    %cst_19 = arith.constant dense<0.000000e+00> : vector<2x32xf32>
    %34 = tpu.matmul %31, %6, %cst_19 {dimension_numbers = #tpu.dot_dimension_numbers<[1], [0], [0], [1], [0, 0, 1, 1], [], []>} : vector<2x32xf32>, vector<32x32xf32>, vector<2x32xf32> -> vector<2x32xf32>
    %35 = arith.addf %33, %34 : vector<2x32xf32>
    %36 = math.tanh %35 : vector<2x32xf32>
    %c10 = arith.constant 10 : index
    %c0_20 = arith.constant 0 : index
    %37 = vector.load %arg10[%c10, %c0_20] : memref<16x32xf32, #tpu.memory_space<vmem>>, vector<2x32xf32>
    tpu.vector_store %arg10[%c10, %c0_20], %36 {strides = array<i32>} : memref<16x32xf32, #tpu.memory_space<vmem>>, vector<2x32xf32>,
    %38 = vector.extract_strided_slice %5 {offsets = [12, 0], sizes = [2, 32], strides = [1, 1]} : vector<16x32xf32> to vector<2x32xf32>
    %cst_21 = arith.constant dense<0.000000e+00> : vector<2x32xf32>
    %39 = tpu.matmul %36, %6, %cst_21 {dimension_numbers = #tpu.dot_dimension_numbers<[1], [0], [0], [1], [0, 0, 1, 1], [], []>} : vector<2x32xf32>, vector<32x32xf32>, vector<2x32xf32> -> vector<2x32xf32>
    %40 = arith.addf %38, %39 : vector<2x32xf32>
    %41 = math.tanh %40 : vector<2x32xf32>
    %c12 = arith.constant 12 : index
    %c0_22 = arith.constant 0 : index
    %42 = vector.load %arg10[%c12, %c0_22] : memref<16x32xf32, #tpu.memory_space<vmem>>, vector<2x32xf32>
    tpu.vector_store %arg10[%c12, %c0_22], %41 {strides = array<i32>} : memref<16x32xf32, #tpu.memory_space<vmem>>, vector<2x32xf32>,
    %43 = vector.extract_strided_slice %5 {offsets = [14, 0], sizes = [2, 32], strides = [1, 1]} : vector<16x32xf32> to vector<2x32xf32>
    %cst_23 = arith.constant dense<0.000000e+00> : vector<2x32xf32>
    %44 = tpu.matmul %41, %6, %cst_23 {dimension_numbers = #tpu.dot_dimension_numbers<[1], [0], [0], [1], [0, 0, 1, 1], [], []>} : vector<2x32xf32>, vector<32x32xf32>, vector<2x32xf32> -> vector<2x32xf32>
    %45 = arith.addf %43, %44 : vector<2x32xf32>
    %46 = math.tanh %45 : vector<2x32xf32>
    %c14 = arith.constant 14 : index
    %c0_24 = arith.constant 0 : index
    %47 = vector.load %arg10[%c14, %c0_24] : memref<16x32xf32, #tpu.memory_space<vmem>>, vector<2x32xf32>
    tpu.vector_store %arg10[%c14, %c0_24], %46 {strides = array<i32>} : memref<16x32xf32, #tpu.memory_space<vmem>>, vector<2x32xf32>,
    %c0_25 = arith.constant 0 : index
    %c0_26 = arith.constant 0 : index
    %48 = vector.load %arg10[%c0_25, %c0_26] : memref<16x32xf32, #tpu.memory_space<vmem>>, vector<16x32xf32>
    %c0_27 = arith.constant 0 : index
    %c0_28 = arith.constant 0 : index
    %49 = vector.load %arg4[%c0_27, %c0_28] : memref<32x32xf32, #tpu.memory_space<vmem>>, vector<32x32xf32>
    %cst_29 = arith.constant dense<0.000000e+00> : vector<16x32xf32>
    %50 = tpu.matmul %48, %49, %cst_29 {dimension_numbers = #tpu.dot_dimension_numbers<[1], [0], [0], [1], [0, 0, 1, 1], [], []>} : vector<16x32xf32>, vector<32x32xf32>, vector<16x32xf32> -> vector<16x32xf32>
    %c0_30 = arith.constant 0 : index
    %c0_31 = arith.constant 0 : index
    %51 = vector.load %arg6[%c0_30, %c0_31] : memref<1x32xf32, #tpu.memory_space<vmem>>, vector<1x32xf32>
    %52 = vector.broadcast %51 : vector<1x32xf32> to vector<16x32xf32>
    %53 = arith.addf %50, %52 : vector<16x32xf32>
    %c0_32 = arith.constant 0 : index
    %c0_33 = arith.constant 0 : index
    %54 = vector.load %arg5[%c0_32, %c0_33] : memref<32x32xf32, #tpu.memory_space<vmem>>, vector<32x32xf32>
    %cst_34 = arith.constant 0.000000e+00 : f32
    %55 = vector.broadcast %cst_34 : f32 to vector<2x32xf32>
    %56 = vector.extract_strided_slice %53 {offsets = [0, 0], sizes = [2, 32], strides = [1, 1]} : vector<16x32xf32> to vector<2x32xf32>
    %cst_35 = arith.constant dense<0.000000e+00> : vector<2x32xf32>
    %57 = tpu.matmul %55, %54, %cst_35 {dimension_numbers = #tpu.dot_dimension_numbers<[1], [0], [0], [1], [0, 0, 1, 1], [], []>} : vector<2x32xf32>, vector<32x32xf32>, vector<2x32xf32> -> vector<2x32xf32>
    %58 = arith.addf %56, %57 : vector<2x32xf32>
    %59 = math.tanh %58 : vector<2x32xf32>
    %c0_36 = arith.constant 0 : index
    %c0_37 = arith.constant 0 : index
    %60 = vector.load %arg10[%c0_36, %c0_37] : memref<16x32xf32, #tpu.memory_space<vmem>>, vector<2x32xf32>
    tpu.vector_store %arg10[%c0_36, %c0_37], %59 {strides = array<i32>} : memref<16x32xf32, #tpu.memory_space<vmem>>, vector<2x32xf32>,
    %61 = vector.extract_strided_slice %53 {offsets = [2, 0], sizes = [2, 32], strides = [1, 1]} : vector<16x32xf32> to vector<2x32xf32>
    %cst_38 = arith.constant dense<0.000000e+00> : vector<2x32xf32>
    %62 = tpu.matmul %59, %54, %cst_38 {dimension_numbers = #tpu.dot_dimension_numbers<[1], [0], [0], [1], [0, 0, 1, 1], [], []>} : vector<2x32xf32>, vector<32x32xf32>, vector<2x32xf32> -> vector<2x32xf32>
    %63 = arith.addf %61, %62 : vector<2x32xf32>
    %64 = math.tanh %63 : vector<2x32xf32>
    %c2_39 = arith.constant 2 : index
    %c0_40 = arith.constant 0 : index
    %65 = vector.load %arg10[%c2_39, %c0_40] : memref<16x32xf32, #tpu.memory_space<vmem>>, vector<2x32xf32>
    tpu.vector_store %arg10[%c2_39, %c0_40], %64 {strides = array<i32>} : memref<16x32xf32, #tpu.memory_space<vmem>>, vector<2x32xf32>,
    %66 = vector.extract_strided_slice %53 {offsets = [4, 0], sizes = [2, 32], strides = [1, 1]} : vector<16x32xf32> to vector<2x32xf32>
    %cst_41 = arith.constant dense<0.000000e+00> : vector<2x32xf32>
    %67 = tpu.matmul %64, %54, %cst_41 {dimension_numbers = #tpu.dot_dimension_numbers<[1], [0], [0], [1], [0, 0, 1, 1], [], []>} : vector<2x32xf32>, vector<32x32xf32>, vector<2x32xf32> -> vector<2x32xf32>
    %68 = arith.addf %66, %67 : vector<2x32xf32>
    %69 = math.tanh %68 : vector<2x32xf32>
    %c4_42 = arith.constant 4 : index
    %c0_43 = arith.constant 0 : index
    %70 = vector.load %arg10[%c4_42, %c0_43] : memref<16x32xf32, #tpu.memory_space<vmem>>, vector<2x32xf32>
    tpu.vector_store %arg10[%c4_42, %c0_43], %69 {strides = array<i32>} : memref<16x32xf32, #tpu.memory_space<vmem>>, vector<2x32xf32>,
    %71 = vector.extract_strided_slice %53 {offsets = [6, 0], sizes = [2, 32], strides = [1, 1]} : vector<16x32xf32> to vector<2x32xf32>
    %cst_44 = arith.constant dense<0.000000e+00> : vector<2x32xf32>
    %72 = tpu.matmul %69, %54, %cst_44 {dimension_numbers = #tpu.dot_dimension_numbers<[1], [0], [0], [1], [0, 0, 1, 1], [], []>} : vector<2x32xf32>, vector<32x32xf32>, vector<2x32xf32> -> vector<2x32xf32>
    %73 = arith.addf %71, %72 : vector<2x32xf32>
    %74 = math.tanh %73 : vector<2x32xf32>
    %c6_45 = arith.constant 6 : index
    %c0_46 = arith.constant 0 : index
    %75 = vector.load %arg10[%c6_45, %c0_46] : memref<16x32xf32, #tpu.memory_space<vmem>>, vector<2x32xf32>
    tpu.vector_store %arg10[%c6_45, %c0_46], %74 {strides = array<i32>} : memref<16x32xf32, #tpu.memory_space<vmem>>, vector<2x32xf32>,
    %76 = vector.extract_strided_slice %53 {offsets = [8, 0], sizes = [2, 32], strides = [1, 1]} : vector<16x32xf32> to vector<2x32xf32>
    %cst_47 = arith.constant dense<0.000000e+00> : vector<2x32xf32>
    %77 = tpu.matmul %74, %54, %cst_47 {dimension_numbers = #tpu.dot_dimension_numbers<[1], [0], [0], [1], [0, 0, 1, 1], [], []>} : vector<2x32xf32>, vector<32x32xf32>, vector<2x32xf32> -> vector<2x32xf32>
    %78 = arith.addf %76, %77 : vector<2x32xf32>
    %79 = math.tanh %78 : vector<2x32xf32>
    %c8_48 = arith.constant 8 : index
    %c0_49 = arith.constant 0 : index
    %80 = vector.load %arg10[%c8_48, %c0_49] : memref<16x32xf32, #tpu.memory_space<vmem>>, vector<2x32xf32>
    tpu.vector_store %arg10[%c8_48, %c0_49], %79 {strides = array<i32>} : memref<16x32xf32, #tpu.memory_space<vmem>>, vector<2x32xf32>,
    %81 = vector.extract_strided_slice %53 {offsets = [10, 0], sizes = [2, 32], strides = [1, 1]} : vector<16x32xf32> to vector<2x32xf32>
    %cst_50 = arith.constant dense<0.000000e+00> : vector<2x32xf32>
    %82 = tpu.matmul %79, %54, %cst_50 {dimension_numbers = #tpu.dot_dimension_numbers<[1], [0], [0], [1], [0, 0, 1, 1], [], []>} : vector<2x32xf32>, vector<32x32xf32>, vector<2x32xf32> -> vector<2x32xf32>
    %83 = arith.addf %81, %82 : vector<2x32xf32>
    %84 = math.tanh %83 : vector<2x32xf32>
    %c10_51 = arith.constant 10 : index
    %c0_52 = arith.constant 0 : index
    %85 = vector.load %arg10[%c10_51, %c0_52] : memref<16x32xf32, #tpu.memory_space<vmem>>, vector<2x32xf32>
    tpu.vector_store %arg10[%c10_51, %c0_52], %84 {strides = array<i32>} : memref<16x32xf32, #tpu.memory_space<vmem>>, vector<2x32xf32>,
    %86 = vector.extract_strided_slice %53 {offsets = [12, 0], sizes = [2, 32], strides = [1, 1]} : vector<16x32xf32> to vector<2x32xf32>
    %cst_53 = arith.constant dense<0.000000e+00> : vector<2x32xf32>
    %87 = tpu.matmul %84, %54, %cst_53 {dimension_numbers = #tpu.dot_dimension_numbers<[1], [0], [0], [1], [0, 0, 1, 1], [], []>} : vector<2x32xf32>, vector<32x32xf32>, vector<2x32xf32> -> vector<2x32xf32>
    %88 = arith.addf %86, %87 : vector<2x32xf32>
    %89 = math.tanh %88 : vector<2x32xf32>
    %c12_54 = arith.constant 12 : index
    %c0_55 = arith.constant 0 : index
    %90 = vector.load %arg10[%c12_54, %c0_55] : memref<16x32xf32, #tpu.memory_space<vmem>>, vector<2x32xf32>
    tpu.vector_store %arg10[%c12_54, %c0_55], %89 {strides = array<i32>} : memref<16x32xf32, #tpu.memory_space<vmem>>, vector<2x32xf32>,
    %91 = vector.extract_strided_slice %53 {offsets = [14, 0], sizes = [2, 32], strides = [1, 1]} : vector<16x32xf32> to vector<2x32xf32>
    %cst_56 = arith.constant dense<0.000000e+00> : vector<2x32xf32>
    %92 = tpu.matmul %89, %54, %cst_56 {dimension_numbers = #tpu.dot_dimension_numbers<[1], [0], [0], [1], [0, 0, 1, 1], [], []>} : vector<2x32xf32>, vector<32x32xf32>, vector<2x32xf32> -> vector<2x32xf32>
    %93 = arith.addf %91, %92 : vector<2x32xf32>
    %94 = math.tanh %93 : vector<2x32xf32>
    %c14_57 = arith.constant 14 : index
    %c0_58 = arith.constant 0 : index
    %95 = vector.load %arg10[%c14_57, %c0_58] : memref<16x32xf32, #tpu.memory_space<vmem>>, vector<2x32xf32>
    tpu.vector_store %arg10[%c14_57, %c0_58], %94 {strides = array<i32>} : memref<16x32xf32, #tpu.memory_space<vmem>>, vector<2x32xf32>,
    %c0_59 = arith.constant 0 : index
    %c0_60 = arith.constant 0 : index
    %96 = vector.load %arg10[%c0_59, %c0_60] : memref<16x32xf32, #tpu.memory_space<vmem>>, vector<16x32xf32>
    %c0_61 = arith.constant 0 : index
    %c0_62 = arith.constant 0 : index
    %97 = vector.load %arg7[%c0_61, %c0_62] : memref<32x2xf32, #tpu.memory_space<vmem>>, vector<32x2xf32>
    %cst_63 = arith.constant dense<0.000000e+00> : vector<16x2xf32>
    %98 = tpu.matmul %96, %97, %cst_63 {dimension_numbers = #tpu.dot_dimension_numbers<[1], [0], [0], [1], [0, 0, 1, 1], [], []>} : vector<16x32xf32>, vector<32x2xf32>, vector<16x2xf32> -> vector<16x2xf32>
    %c0_64 = arith.constant 0 : index
    %c0_65 = arith.constant 0 : index
    %99 = vector.load %arg8[%c0_64, %c0_65] : memref<1x2xf32, #tpu.memory_space<vmem>>, vector<1x2xf32>
    %100 = vector.broadcast %99 : vector<1x2xf32> to vector<16x2xf32>
    %101 = arith.addf %98, %100 : vector<16x2xf32>
    %c0_66 = arith.constant 0 : index
    %c0_67 = arith.constant 0 : index
    %102 = vector.load %arg9[%c0_66, %c0_67] : memref<16x2xf32, #tpu.memory_space<vmem>>, vector<16x2xf32>
    tpu.vector_store %arg9[%c0_66, %c0_67], %101 {strides = array<i32>} : memref<16x2xf32, #tpu.memory_space<vmem>>, vector<16x2xf32>,
    return
  }
}

</mosaic_0001>

<bundles_post_ra>
// kernel: rnn_forward.1
= control target key start
LH: loop header
LB: loop body
LE: loop exit
PB: predicated region body
PF: predicated region fallthrough
CT: control target
= control target key end

     0   :  { %vm2327_vm0 = vmmov 0   ;;  %vm341_vm1 = vcmask 254976   ;;  %vm265_vm2 = vcmask 261120   ;;  %vm421_vm3 = vcmask 257026   ;;  %s2810_s1 = inlined_call_operand.vmem [shape: f32[512,32], index: 1, kind: input, shape index: {}]   ;;  %s2811_s0 = inlined_call_operand.vmem [shape: f32[16,512], index: 0, kind: input, shape index: {}]   ;;  %s2812_s2 = inlined_call_operand.vmem [shape: f32[32,32], index: 2, kind: input, shape index: {}]   ;;  %s2813_s3 = inlined_call_operand.vmem [shape: f32[1,32], index: 3, kind: input, shape index: {}]   ;;  %s2814_s4 = inlined_call_operand.vmem [shape: f32[32,32], index: 4, kind: input, shape index: {}]   ;;  %s2815_s5 = inlined_call_operand.vmem [shape: f32[32,32], index: 5, kind: input, shape index: {}]   ;;  %s2816_s6 = inlined_call_operand.vmem [shape: f32[1,32], index: 6, kind: input, shape index: {}]   ;;  %s2817_s7 = inlined_call_operand.vmem [shape: f32[32,2], index: 7, kind: input, shape index: {}]   ;;  %s2818_s8 = inlined_call_operand.vmem [shape: f32[1,2], index: 8, kind: input, shape index: {}]   ;;  %s2819_s9 = inlined_call_operand.vmem [shape: f32[16,2], index: 9, kind: output, shape index: {}]  }
   0x1   :  { %v56_v0 = vld [vmem:[%s2810_s1 + $0x80] sm:$0xff]  ;;  %v57_v1 = vld [vmem:[%s2810_s1 + $0x88] sm:$0xff]  ;;  %v58_v11 = vld [vmem:[%s2810_s1 + $0x90] sm:$0xff]  ;;  %vm502_vm4 = vcmask 259076   ;;  %vm583_vm5 = vcmask 261126   ;;  %vm1721_vm6 = vcmask 15360  }
   0x2   :  { %v40_v2 = vld [vmem:[%s2810_s1] sm:$0xff]  ;;  %v2115_v3 = vpack.c.bf16 %v57_v1, %v56_v0  ;;  %v41_v4 = vld [vmem:[%s2810_s1 + $0x8] sm:$0xff]  ;;  %v59_v13 = vld [vmem:[%s2810_s1 + $0x98] sm:$0xff] }
   0x3   :  { %v88_v5 = vld [vmem:[%s2810_s1 + $0x180] sm:$0xff]  ;;  %v89_v6 = vld [vmem:[%s2810_s1 + $0x188] sm:$0xff]  ;;  %v2117_v7 = vpack.c.bf16 %v41_v4, %v40_v2  ;;  %v42_v14 = vld [vmem:[%s2810_s1 + $0x10] sm:$0xff]  ;;  %v2119_v16 = vpack.c.bf16 %v59_v13, %v58_v11 }
   0x4   :  { %v2147_v8 = vpack.c.bf16 %v89_v6, %v88_v5  ;;  %v72_v9 = vld [vmem:[%s2810_s1 + $0x100] sm:$0xff]  ;;  %v73_v10 = vld [vmem:[%s2810_s1 + $0x108] sm:$0xff]  ;;  %2116 = vmatprep.subr.bf16.mxu0 %v2115_v3  ;;  %v43_v15 = vld [vmem:[%s2810_s1 + $0x18] sm:$0xff] }
   0x5   :  { %v2149_v12 = vpack.c.bf16 %v73_v10, %v72_v9  ;;  %2118 = vmatpush3.bf16.msra.mxu0 %v2117_v7  ;;  %v2121_v17 = vpack.c.bf16 %v43_v15, %v42_v14  ;;  %v90_v18 = vld [vmem:[%s2810_s1 + $0x190] sm:$0xff]  ;;  %v91_v19 = vld [vmem:[%s2810_s1 + $0x198] sm:$0xff]  ;;  %v60_v23 = vld [vmem:[%s2810_s1 + $0xa0] sm:$0xff] }
   0x6   :  { %2148 = vmatprep.subr.bf16.mxu1 %v2147_v8  ;;  %v74_v20 = vld [vmem:[%s2810_s1 + $0x110] sm:$0xff]  ;;  %v2151_v21 = vpack.c.bf16 %v91_v19, %v90_v18  ;;  %v75_v22 = vld [vmem:[%s2810_s1 + $0x118] sm:$0xff]  ;;  %v61_v24 = vld [vmem:[%s2810_s1 + $0xa8] sm:$0xff]  ;;  %2120 = vmatprep.subr.bf16.mxu0 %v2119_v16 }
   0x7   :  { %2150 = vmatpush3.bf16.msra.mxu1 %v2149_v12  ;;  %v2153_v25 = vpack.c.bf16 %v75_v22, %v74_v20  ;;  %v2123_v26 = vpack.c.bf16 %v61_v24, %v60_v23  ;;  %v44_v27 = vld [vmem:[%s2810_s1 + $0x20] sm:$0xff]  ;;  %v45_v28 = vld [vmem:[%s2810_s1 + $0x28] sm:$0xff]  ;;  %v62_v35 = vld [vmem:[%s2810_s1 + $0xb0] sm:$0xff] }
   0x8   :  { %v92_v29 = vld [vmem:[%s2810_s1 + $0x1a0] sm:$0xff]  ;;  %2152 = vmatprep.subr.bf16.mxu1 %v2151_v21  ;;  %v93_v30 = vld [vmem:[%s2810_s1 + $0x1a8] sm:$0xff]  ;;  %v2125_v33 = vpack.c.bf16 %v45_v28, %v44_v27  ;;  %v63_v36 = vld [vmem:[%s2810_s1 + $0xb8] sm:$0xff] }
   0x9   :  { %v76_v31 = vld [vmem:[%s2810_s1 + $0x120] sm:$0xff]  ;;  %v77_v32 = vld [vmem:[%s2810_s1 + $0x128] sm:$0xff]  ;;  %2122 = vmatpush3.bf16.msra.mxu0 %v2121_v17  ;;  %v2155_v34 = vpack.c.bf16 %v93_v30, %v92_v29  ;;  %v46_v37 = vld [vmem:[%s2810_s1 + $0x30] sm:$0xff]  ;;  %v2127_v39 = vpack.c.bf16 %v63_v36, %v62_v35 }
   0xa   :  { %2124 = vmatprep.subr.bf16.mxu0 %v2123_v26  ;;  %v2157_v38 = vpack.c.bf16 %v77_v32, %v76_v31  ;;  %v47_v40 = vld [vmem:[%s2810_s1 + $0x38] sm:$0xff]  ;;  %v94_v41 = vld [vmem:[%s2810_s1 + $0x1b0] sm:$0xff]  ;;  %v64_v46 = vld [vmem:[%s2810_s1 + $0xc0] sm:$0xff] }
   0xb   :  { %2154 = vmatpush3.bf16.msra.mxu1 %v2153_v25  ;;  %v95_v42 = vld [vmem:[%s2810_s1 + $0x1b8] sm:$0xff]  ;;  %v78_v44 = vld [vmem:[%s2810_s1 + $0x130] sm:$0xff]  ;;  %v65_v47 = vld [vmem:[%s2810_s1 + $0xc8] sm:$0xff]  ;;  %v2129_v48 = vpack.c.bf16 %v47_v40, %v46_v37 }
   0xc   :  { %2156 = vmatprep.subr.bf16.mxu1 %v2155_v34  ;;  %v2159_v43 = vpack.c.bf16 %v95_v42, %v94_v41  ;;  %v79_v45 = vld [vmem:[%s2810_s1 + $0x138] sm:$0xff]  ;;  %v96_v49 = vld [vmem:[%s2810_s1 + $0x1c0] sm:$0xff]  ;;  %v97_v50 = vld [vmem:[%s2810_s1 + $0x1c8] sm:$0xff]  ;;  %v2131_v52 = vpack.c.bf16 %v65_v47, %v64_v46  ;;  %v2328_v47 = vmov 0.0  }
   0xd   :  { %2126 = vmatpush3.bf16.msra.mxu0 %v2125_v33  ;;  %v2161_v51 = vpack.c.bf16 %v79_v45, %v78_v44  ;;  %v48_v53 = vld [vmem:[%s2810_s1 + $0x40] sm:$0xff]  ;;  %v49_v54 = vld [vmem:[%s2810_s1 + $0x48] sm:$0xff]  ;;  %v2163_v56 = vpack.c.bf16 %v97_v50, %v96_v49  ;;  %v66_v58 = vld [vmem:[%s2810_s1 + $0xd0] sm:$0xff] }
   0xe   :  { %2128 = vmatprep.subr.bf16.mxu0 %v2127_v39  ;;  %v80_v55 = vld [vmem:[%s2810_s1 + $0x140] sm:$0xff]  ;;  %v81_v57 = vld [vmem:[%s2810_s1 + $0x148] sm:$0xff]  ;;  %v67_v59 = vld [vmem:[%s2810_s1 + $0xd8] sm:$0xff]  ;;  %v2133_v62 = vpack.c.bf16 %v49_v54, %v48_v53 }
   0xf   :  { %2158 = vmatpush3.bf16.msra.mxu1 %v2157_v38  ;;  %v98_v60 = vld [vmem:[%s2810_s1 + $0x1d0] sm:$0xff]  ;;  %v99_v61 = vld [vmem:[%s2810_s1 + $0x1d8] sm:$0xff]  ;;  %v2165_v63 = vpack.c.bf16 %v81_v57, %v80_v55  ;;  %v2135_v0 = vpack.c.bf16 %v67_v59, %v66_v58  ;;  %v68_v6 = vld [vmem:[%s2810_s1 + $0xe0] sm:$0xff]  ;;  %v2326_v38 = vmov 0.0|0.0  }
  0x10   :  { %2160 = vmatprep.subr.bf16.mxu1 %v2159_v43  ;;  %v50_v1 = vld [vmem:[%s2810_s1 + $0x50] sm:$0xff]  ;;  %v51_v2 = vld [vmem:[%s2810_s1 + $0x58] sm:$0xff]  ;;  %v2167_v4 = vpack.c.bf16 %v99_v61, %v98_v60  ;;  %v69_v7 = vld [vmem:[%s2810_s1 + $0xe8] sm:$0xff] }
  0x11   :  { %2130 = vmatpush3.bf16.msra.mxu0 %v2129_v48  ;;  %v82_v3 = vld [vmem:[%s2810_s1 + $0x150] sm:$0xff]  ;;  %v83_v5 = vld [vmem:[%s2810_s1 + $0x158] sm:$0xff]  ;;  %v100_v8 = vld [vmem:[%s2810_s1 + $0x1e0] sm:$0xff]  ;;  %v2137_v10 = vpack.c.bf16 %v51_v2, %v50_v1  ;;  %v2139_v14 = vpack.c.bf16 %v69_v7, %v68_v6 }
  0x12   :  { %2132 = vmatprep.subr.bf16.mxu0 %v2131_v52  ;;  %v101_v9 = vld [vmem:[%s2810_s1 + $0x1e8] sm:$0xff]  ;;  %v52_v11 = vld [vmem:[%s2810_s1 + $0x60] sm:$0xff]  ;;  %v2169_v13 = vpack.c.bf16 %v83_v5, %v82_v3  ;;  %v70_v19 = vld [vmem:[%s2810_s1 + $0xf0] sm:$0xff] }
  0x13   :  { %2162 = vmatpush3.bf16.msra.mxu1 %v2161_v51  ;;  %v33_v12 = vld [vmem:[%s2811_s0 + $0x8] sm:$0xff]  ;;  %v84_v16 = vld [vmem:[%s2810_s1 + $0x160] sm:$0xff]  ;;  %v2171_v18 = vpack.c.bf16 %v101_v9, %v100_v8  ;;  %v71_v20 = vld [vmem:[%s2810_s1 + $0xf8] sm:$0xff] }
  0x14   :  { %2164 = vmatprep.subr.bf16.mxu1 %v2163_v56  ;;  %v53_v15 = vld [vmem:[%s2810_s1 + $0x68] sm:$0xff]  ;;  %175 = vmatprep.mubr.f32.mxu0 %v33_v12  ;;  %v35_v21 = vld [vmem:[%s2811_s0 + $0x18] sm:$0xff]  ;;  %v102_v22 = vld [vmem:[%s2810_s1 + $0x1f0] sm:$0xff]  ;;  %v2143_v26 = vpack.c.bf16 %v71_v20, %v70_v19 }
  0x15   :  { %2134 = vmatpush3.bf16.msra.mxu0 %v2133_v62  ;;  %v85_v17 = vld [vmem:[%s2810_s1 + $0x168] sm:$0xff]  ;;  %v103_v23 = vld [vmem:[%s2810_s1 + $0x1f8] sm:$0xff]  ;;  %250 = vmatprep.mubr.f32.mxu1 %v35_v21  ;;  %v2141_v24 = vpack.c.bf16 %v53_v15, %v52_v11  ;;  %v54_v27 = vld [vmem:[%s2810_s1 + $0x70] sm:$0xff] }
  0x16   :  { %2136 = vmatprep.subr.bf16.mxu0 %v2135_v0  ;;  %v2173_v25 = vpack.c.bf16 %v85_v17, %v84_v16  ;;  %v55_v28 = vld [vmem:[%s2810_s1 + $0x78] sm:$0xff]  ;;  %v2175_v29 = vpack.c.bf16 %v103_v23, %v102_v22  ;;  %v86_v30 = vld [vmem:[%s2810_s1 + $0x170] sm:$0xff]  ;;  %v261_v34 = vld [vmem:[%s2812_s2] sm:$0xff] }
  0x17   :  { %2166 = vmatpush3.bf16.msra.mxu1 %v2165_v63  ;;  %v87_v31 = vld [vmem:[%s2810_s1 + $0x178] sm:$0xff]  ;;  %v2145_v32 = vpack.c.bf16 %v55_v28, %v54_v27  ;;  %v262_v35 = vld [vmem:[%s2812_s2 + $0x8] sm:$0xff]  ;;  %v32_v36 = vld [vmem:[%s2811_s0] sm:$0xff] }
  0x18   :  { %2168 = vmatprep.subr.bf16.mxu1 %v2167_v4  ;;  %v2177_v33 = vpack.c.bf16 %v87_v31, %v86_v30  ;;  %v2586_v37 = vpack.c.bf16 %v262_v35, %v261_v34  ;;  %v34_v39 = vld [vmem:[%s2811_s0 + $0x10] sm:$0xff]  ;;  %v264_v41 = vld [vmem:[%s2812_s2 + $0x18] sm:$0xff]  ;;  %v37_v42 = vld [vmem:[%s2811_s0 + $0x28] sm:$0xff] }
  0x19   :  { %2138 = vmatpush3.bf16.msra.mxu0 %v2137_v10  ;;  %v263_v40 = vld [vmem:[%s2812_s2 + $0x10] sm:$0xff]  ;;  %v39_v43 = vld [vmem:[%s2811_s0 + $0x38] sm:$0xff]  ;;  %v36_v44 = vld [vmem:[%s2811_s0 + $0x20] sm:$0xff] }
  0x1a   :  { %2140 = vmatprep.subr.bf16.mxu0 %v2139_v14  ;;  %v2609_v45 = vpack.c.bf16 %v264_v41, %v263_v40  ;;  %v38_v46 = vld [vmem:[%s2811_s0 + $0x30] sm:$0xff]  ;;  %v1728_v49 = vld [vmem:[%s2813_s3] ss:$0 sm:$0xff] }
  0x1b   :  { %2170 = vmatpush3.bf16.msra.mxu1 %v2169_v13  ;;  %v903_v41 = vld [vmem:[%s2814_s4] sm:$0xff] }
  0x1c   :  { %2172 = vmatprep.subr.bf16.mxu1 %v2171_v18 }
  0x1d   :  { %2142 = vmatpush3.bf16.msra.mxu0 %v2141_v24 }
  0x1e   :  { %2144 = vmatprep.subr.bf16.mxu0 %v2143_v26 }
  0x1f   :  { %2174 = vmatpush3.bf16.msra.mxu1 %v2173_v25 }
  0x20   :  { %2176 = vmatprep.subr.bf16.mxu1 %v2175_v29 }
  0x21   :  { %2146 = vmatpush3.bf16.msra.mxu0 %v2145_v32 }
  0x22   :  { %2179 = vmatprep.subr.bf16.mxu0 %v2326_v38 }
  0x23   :  { %2178 = vmatpush3.bf16.msra.mxu1 %v2177_v33 }
  0x24   :  { %2185 = vmatprep.subr.bf16.mxu1 %v2326_v38  ;;  %176 = vmatmul.mubr.f32.vlgmr.msra.gmra.mrb[0].mxu0 %v32_v36 }
  0x25   :  { %2181 = vmatpush3.bf16.msra.mxu0 %v2586_v37  ;;  %180 = vmatprep.mubr.f32.mxu0 %v37_v42  ;;  %v904_v42 = vld [vmem:[%s2814_s4 + $0x8] sm:$0xff] }
  0x26   :  { %251 = vmatmul.mubr.f32.vlgmr.msra.gmra.mrb[0].mxu1 %v34_v39  ;;  %2182 = vmatprep.subr.bf16.mxu0 %v2326_v38 }
  0x27   :  { %255 = vmatprep.mubr.f32.mxu1 %v39_v43  ;;  %2187 = vmatpush3.bf16.msra.mxu1 %v2586_v37  ;;  %v2227_v43 = vpack.c.bf16 %v904_v42, %v903_v41  ;;  %v1631_v42 = vld [vmem:[%s2817_s7 + $0x10] sm:$0xff] }
  0x28   :  { %181 = vmatmul.mubr.f32.gmra.mrb[2].mxu0 %v36_v44  ;;  %2188 = vmatprep.subr.bf16.mxu1 %v2326_v38  ;;  %v905_v44 = vld [vmem:[%s2814_s4 + $0x10] sm:$0xff] }
  0x29   :  { %2184 = vmatpush3.bf16.msra.mxu0 %v2609_v45  ;;  %1925 = vmatprep.mubr.msk.f32.mxu0 %vm2327_vm0, %v2328_v47 }
  0x2a   :  { %256 = vmatmul.mubr.f32.gmra.mrb[2].mxu1 %v38_v46  ;;  %2191 = vmatprep.subr.bf16.mxu0 %v2326_v38  ;;  %v995_v46 = vld [vmem:[%s2815_s5] sm:$0xff] }
  0x2b   :  { %1936 = vmatprep.mubr.msk.f32.mxu1 %vm2327_vm0, %v2328_v47  ;;  %2190 = vmatpush3.bf16.msra.mxu1 %v2609_v45 }
  0x2c   :  { %1926 = vmatmul.mubr.f32.vlgmr.msra.gmra.mrb[4].mxu0 %v2328_v47  ;;  %2197 = vmatprep.subr.bf16.mxu1 %v2326_v38 }
  0x2d   :  { %2193 = vmatpush3.bf16.msra.mxu0 %v2586_v37  ;;  %1947 = vmatprep.mubr.msk.f32.mxu0 %vm2327_vm0, %v2328_v47 }
  0x2e   :  { %2194 = vmatprep.subr.bf16.mxu0 %v2326_v38 }
  0x31   :  { %2196 = vmatpush3.bf16.msra.mxu0 %v2609_v45 }
  0x32   :  { %2203 = vmatprep.subr.bf16.mxu0 %v2326_v38 }
  0xf7   :  { %v1781_v48 = vpop.f32.mrb[0].mxu0 }
  0xf8   :  { %v1782_v50 = vpop.f32.mrb[1].mxu0 }
  0xf9   :  { %v1819_v51 = vpop.f32.mrb[0].mxu1  ;;  %v1783_v52 = vadd.f32 %v1782_v50, %v1781_v48 }
  0xfa   :  { %v1820_v53 = vpop.f32.mrb[1].mxu1 }
  0xfb   :  { %v1821_v54 = vadd.f32 %v1820_v53, %v1819_v51  ;;  %v178_v55 = vadd.f32 %v1783_v52, %v1728_v49  ;;  %v1784_v56 = vpop.f32.mrb[2].mxu0  ;;  %v997_v51 = vld [vmem:[%s2815_s5 + $0x10] sm:$0xff]  ;;  %v998_v52 = vld [vmem:[%s2815_s5 + $0x18] sm:$0xff] }
  0xfc   :  { %v1785_v57 = vpop.f32.mrb[3].mxu0  ;;  %v2714_v53 = vpack.c.bf16 %v998_v52, %v997_v51  ;;  %v1746_v52 = vld [vmem:[%s2818_s8] ss:$0 sm:$0xff] }
  0xfd   :  { %v1822_v58 = vpop.f32.mrb[2].mxu1  ;;  %v253_v59 = vadd.f32 %v1821_v54, %v178_v55  ;;  %v1786_v60 = vadd.f32 %v1785_v57, %v1784_v56 }
  0xfe   :  { %v1823_v61 = vpop.f32.mrb[3].mxu1 }
  0xff   :  { %v1824_v62 = vadd.f32 %v1823_v61, %v1822_v58  ;;  %v183_v63 = vadd.f32 %v1786_v60, %v1728_v49  ;;  %v335_v0 = vpop.f32.mrb[4].mxu0  ;;  %v996_v49 = vld [vmem:[%s2815_s5 + $0x8] sm:$0xff] }
 0x100   :  { %v339_v1 = vadd.f32 %v335_v0, %v253_v59  ;;  %v1927_v2 = vpop.f32.mrb[5].mxu0  ;;  %v2704_v50 = vpack.c.bf16 %v996_v49, %v995_v46 }
 0x101   :  { %v2635_v3 = vadd.f32 %v1824_v62, %v183_v63  ;;  %v1736_v62 = vld [vmem:[%s2816_s6] ss:$0 sm:$0xff] }
 0x102   :  { %2294 = vtanh.f32 %v339_v1 }
 0x10c   :  { %v2295_v4 = vpop.eup %2294 }
 0x10d   :  { %342 = vst.msk [vmem:[#allocation2] sm:$0x3] %vm341_vm1, %v2295_v4  ;;  %1937 = vmatmul.mubr.msk.f32.vlgmr.msra.gmra.mrb[4].mxu1 %vm265_vm2, %v2295_v4 }
 0x10e   :  { %2199 = vmatpush3.bf16.msra.mxu1 %v2586_v37  ;;  %1958 = vmatprep.mubr.msk.f32.mxu1 %vm2327_vm0, %v2328_v47 }
 0x10f   :  { %2200 = vmatprep.subr.bf16.mxu1 %v2326_v38 }
 0x112   :  { %2202 = vmatpush3.bf16.msra.mxu1 %v2609_v45 }
 0x113   :  { %2209 = vmatprep.subr.bf16.mxu1 %v2326_v38 }
 0x1e0   :  { %v412_v5 = vpop.f32.mrb[4].mxu1 }
 0x1e1   :  { %v417_v6 = vrot.slane %v412_v5, 6  ;;  %v1938_v7 = vpop.f32.mrb[5].mxu1 }
 0x1e3   :  { %v419_v8 = vadd.f32 %v417_v6, %v253_v59 }
 0x1e5   :  { %2296 = vtanh.f32 %v419_v8 }
 0x1ef   :  { %v2297_v9 = vpop.eup %2296 }
 0x1f0   :  { %422 = vst.msk [vmem:[#allocation2] sm:$0xc] %vm421_vm3, %v2297_v9  ;;  %v424_v10 = vrot.slane %v2297_v9, 2 }
 0x1f2   :  { %1948 = vmatmul.mubr.msk.f32.vlgmr.msra.gmra.mrb[6].mxu0 %vm265_vm2, %v424_v10 }
 0x1f3   :  { %2205 = vmatpush3.bf16.msra.mxu0 %v2586_v37  ;;  %1969 = vmatprep.mubr.msk.f32.mxu0 %vm2327_vm0, %v2328_v47 }
 0x1f4   :  { %2206 = vmatprep.subr.bf16.mxu0 %v2326_v38 }
 0x1f7   :  { %2208 = vmatpush3.bf16.msra.mxu0 %v2609_v45 }
 0x1f8   :  { %2215 = vmatprep.subr.bf16.mxu0 %v2326_v38 }
 0x2c5   :  { %v493_v11 = vpop.f32.mrb[6].mxu0 }
 0x2c6   :  { %v498_v12 = vrot.slane %v493_v11, 4  ;;  %v1949_v13 = vpop.f32.mrb[7].mxu0 }
 0x2c8   :  { %v500_v14 = vadd.f32 %v498_v12, %v253_v59 }
 0x2ca   :  { %2298 = vtanh.f32 %v500_v14 }
 0x2d4   :  { %v2299_v15 = vpop.eup %2298 }
 0x2d5   :  { %503 = vst.msk [vmem:[#allocation2] sm:$0x30] %vm502_vm4, %v2299_v15  ;;  %v505_v16 = vrot.slane %v2299_v15, 4 }
 0x2d7   :  { %1959 = vmatmul.mubr.msk.f32.vlgmr.msra.gmra.mrb[6].mxu1 %vm265_vm2, %v505_v16 }
 0x2d8   :  { %2211 = vmatpush3.bf16.msra.mxu1 %v2586_v37  ;;  %1980 = vmatprep.mubr.msk.f32.mxu1 %vm2327_vm0, %v2328_v47 }
 0x2d9   :  { %2212 = vmatprep.subr.bf16.mxu1 %v2326_v38 }
 0x2dc   :  { %2214 = vmatpush3.bf16.msra.mxu1 %v2609_v45 }
 0x2dd   :  { %2221 = vmatprep.subr.bf16.mxu1 %v2326_v38 }
 0x3aa   :  { %v574_v17 = vpop.f32.mrb[6].mxu1 }
 0x3ab   :  { %v579_v18 = vrot.slane %v574_v17, 2  ;;  %v1960_v19 = vpop.f32.mrb[7].mxu1 }
 0x3ad   :  { %v581_v20 = vadd.f32 %v579_v18, %v253_v59 }
 0x3af   :  { %2300 = vtanh.f32 %v581_v20 }
 0x3b9   :  { %v2301_v21 = vpop.eup %2300 }
 0x3ba   :  { %584 = vst.msk [vmem:[#allocation2] sm:$0xc0] %vm583_vm5, %v2301_v21  ;;  %v586_v22 = vrot.slane %v2301_v21, 6 }
 0x3bc   :  { %1970 = vmatmul.mubr.msk.f32.vlgmr.msra.gmra.mrb[8].mxu0 %vm265_vm2, %v586_v22 }
 0x3bd   :  { %2217 = vmatpush3.bf16.msra.mxu0 %v2586_v37  ;;  %1991 = vmatprep.mubr.msk.f32.mxu0 %vm2327_vm0, %v2328_v47 }
 0x3be   :  { %2218 = vmatprep.subr.bf16.mxu0 %v2326_v38 }
 0x3c1   :  { %2220 = vmatpush3.bf16.msra.mxu0 %v2609_v45  ;;  %v901_v33 = vld [vmem:[#allocation2] sm:$0xff] }
 0x3c2   :  { %2228 = vmatprep.subr.bf16.mxu0 %v2227_v43 }
 0x48f   :  { %v655_v23 = vpop.f32.mrb[8].mxu0 }
 0x490   :  { %v659_v24 = vadd.f32 %v655_v23, %v2635_v3  ;;  %v1971_v25 = vpop.f32.mrb[9].mxu0 }
 0x492   :  { %2302 = vtanh.f32 %v659_v24 }
 0x49c   :  { %v2303_v26 = vpop.eup %2302 }
 0x49d   :  { %661 = vst.msk [vmem:[#allocation2 + $0x8] sm:$0x3] %vm341_vm1, %v2303_v26  ;;  %1981 = vmatmul.mubr.msk.f32.vlgmr.msra.gmra.mrb[8].mxu1 %vm265_vm2, %v2303_v26 }
 0x49e   :  { %2223 = vmatpush3.bf16.msra.mxu1 %v2586_v37  ;;  %2002 = vmatprep.mubr.msk.f32.mxu1 %vm2327_vm0, %v2328_v47 }
 0x49f   :  { %2224 = vmatprep.subr.bf16.mxu1 %v2326_v38 }
 0x4a2   :  { %2226 = vmatpush3.bf16.msra.mxu1 %v2609_v45  ;;  %v906_v45 = vld [vmem:[%s2814_s4 + $0x18] sm:$0xff] }
 0x4a3   :  { %2235 = vmatprep.subr.bf16.mxu1 %v2326_v38  ;;  %v2231_v48 = vpack.c.bf16 %v906_v45, %v905_v44 }
 0x570   :  { %v731_v27 = vpop.f32.mrb[8].mxu1 }
 0x571   :  { %v736_v28 = vrot.slane %v731_v27, 6  ;;  %v1982_v29 = vpop.f32.mrb[9].mxu1 }
 0x573   :  { %v738_v30 = vadd.f32 %v736_v28, %v2635_v3 }
 0x575   :  { %2304 = vtanh.f32 %v738_v30 }
 0x57f   :  { %v2305_v31 = vpop.eup %2304 }
 0x580   :  { %740 = vst.msk [vmem:[#allocation2 + $0x8] sm:$0xc] %vm421_vm3, %v2305_v31  ;;  %v742_v32 = vrot.slane %v2305_v31, 2 }
 0x582   :  { %1992 = vmatmul.mubr.msk.f32.vlgmr.msra.gmra.mrb[10].mxu0 %vm265_vm2, %v742_v32 }
 0x583   :  { %2013 = vmatprep.mubr.msk.f32.mxu0 %vm265_vm2, %v901_v33  ;;  %2230 = vmatpush3.bf16.msra.mxu0 %v2227_v43  ;;  %v1632_v43 = vld [vmem:[%s2817_s7 + $0x18] sm:$0xff] }
 0x584   :  { %2232 = vmatprep.subr.bf16.mxu0 %v2231_v48  ;;  %v2287_v44 = vpack.c.bf16 %v1632_v43, %v1631_v42 }
 0x587   :  { %2234 = vmatpush3.bf16.msra.mxu0 %v2231_v48 }
 0x588   :  { %2241 = vmatprep.subr.bf16.mxu0 %v2326_v38 }
 0x655   :  { %v811_v34 = vpop.f32.mrb[10].mxu0 }
 0x656   :  { %v816_v35 = vrot.slane %v811_v34, 4  ;;  %v1993_v36 = vpop.f32.mrb[11].mxu0 }
 0x658   :  { %v818_v37 = vadd.f32 %v816_v35, %v2635_v3 }
 0x65a   :  { %2306 = vtanh.f32 %v818_v37 }
 0x664   :  { %v2307_v39 = vpop.eup %2306 }
 0x665   :  { %820 = vst.msk [vmem:[#allocation2 + $0x8] sm:$0x30] %vm502_vm4, %v2307_v39  ;;  %v822_v40 = vrot.slane %v2307_v39, 4  ;;  %v1629_v39 = vld [vmem:[%s2817_s7] sm:$0xff] }
 0x667   :  { %2003 = vmatmul.mubr.msk.f32.vlgmr.msra.gmra.mrb[10].mxu1 %vm265_vm2, %v822_v40  ;;  %v1630_v40 = vld [vmem:[%s2817_s7 + $0x8] sm:$0xff] }
 0x668   :  { %2024 = vmatprep.mubr.msk.f32.mxu1 %vm2327_vm0, %v2328_v47  ;;  %2237 = vmatpush3.bf16.msra.mxu1 %v2704_v50  ;;  %v2283_v41 = vpack.c.bf16 %v1630_v40, %v1629_v39 }
 0x669   :  { %2238 = vmatprep.subr.bf16.mxu1 %v2326_v38 }
 0x66c   :  { %2240 = vmatpush3.bf16.msra.mxu1 %v2714_v53 }
 0x66d   :  { %2247 = vmatprep.subr.bf16.mxu1 %v2326_v38 }
 0x66f   :  { %2025 = vmatmul.mubr.f32.vlgmr.msra.gmra.mrb[12].mxu1 %v2328_v47 }
 0x670   :  { %2249 = vmatpush3.bf16.msra.mxu1 %v2704_v50  ;;  %2046 = vmatprep.mubr.msk.f32.mxu1 %vm2327_vm0, %v2328_v47 }
 0x671   :  { %2250 = vmatprep.subr.bf16.mxu1 %v2326_v38 }
 0x674   :  { %2252 = vmatpush3.bf16.msra.mxu1 %v2714_v53 }
 0x675   :  { %2259 = vmatprep.subr.bf16.mxu1 %v2326_v38 }
 0x73a   :  { %v891_v54 = vpop.f32.mrb[10].mxu1 }
 0x73b   :  { %v896_v55 = vrot.slane %v891_v54, 2  ;;  %v2004_v56 = vpop.f32.mrb[11].mxu1 }
 0x73d   :  { %v898_v57 = vadd.f32 %v896_v55, %v2635_v3 }
 0x73f   :  { %2308 = vtanh.f32 %v898_v57 }
 0x742   :  { %v1065_v60 = vpop.f32.mrb[12].mxu1 }
 0x743   :  { %v2026_v61 = vpop.f32.mrb[13].mxu1 }
 0x749   :  { %v2309_v58 = vpop.eup %2308 }
 0x74a   :  { %900 = vst.msk [vmem:[#allocation2 + $0x8] sm:$0xc0] %vm583_vm5, %v2309_v58 }
 0x751   :  { %v902_v59 = vld [vmem:[#allocation2 + $0x8] sm:$0xff] }
 0x752   :  { %2014 = vmatmul.mubr.msk.f32.vlgmr.msra.gmra.mrb[12].mxu0 %vm265_vm2, %v902_v59 }
 0x753   :  { %2243 = vmatpush3.bf16.msra.mxu0 %v2704_v50  ;;  %2035 = vmatprep.mubr.msk.f32.mxu0 %vm2327_vm0, %v2328_v47 }
 0x754   :  { %2244 = vmatprep.subr.bf16.mxu0 %v2326_v38 }
 0x757   :  { %2246 = vmatpush3.bf16.msra.mxu0 %v2714_v53 }
 0x758   :  { %2253 = vmatprep.subr.bf16.mxu0 %v2326_v38 }
 0x825   :  { %v2015_v63 = vpop.f32.mrb[12].mxu0 }
 0x826   :  { %v2738_v0 = vadd.f32 %v2015_v63, %v1736_v62  ;;  %v986_v1 = vpop.f32.mrb[13].mxu0 }
 0x827   :  { %v987_v2 = vadd.f32 %v1736_v62, %v986_v1 }
 0x829   :  { %v1069_v3 = vadd.f32 %v1065_v60, %v987_v2 }
 0x82b   :  { %2310 = vtanh.f32 %v1069_v3 }
 0x835   :  { %v2311_v4 = vpop.eup %2310 }
 0x836   :  { %1071 = vst.msk [vmem:[#allocation2] sm:$0x3] %vm341_vm1, %v2311_v4  ;;  %2036 = vmatmul.mubr.msk.f32.vlgmr.msra.gmra.mrb[14].mxu0 %vm265_vm2, %v2311_v4 }
 0x837   :  { %2255 = vmatpush3.bf16.msra.mxu0 %v2704_v50  ;;  %2057 = vmatprep.mubr.msk.f32.mxu0 %vm2327_vm0, %v2328_v47 }
 0x838   :  { %2256 = vmatprep.subr.bf16.mxu0 %v2326_v38 }
 0x83b   :  { %2258 = vmatpush3.bf16.msra.mxu0 %v2714_v53 }
 0x83c   :  { %2265 = vmatprep.subr.bf16.mxu0 %v2326_v38 }
 0x909   :  { %v1141_v5 = vpop.f32.mrb[14].mxu0 }
 0x90a   :  { %v1146_v6 = vrot.slane %v1141_v5, 6  ;;  %v2037_v7 = vpop.f32.mrb[15].mxu0 }
 0x90c   :  { %v1148_v8 = vadd.f32 %v1146_v6, %v987_v2 }
 0x90e   :  { %2312 = vtanh.f32 %v1148_v8 }
 0x918   :  { %v2313_v9 = vpop.eup %2312 }
 0x919   :  { %1150 = vst.msk [vmem:[#allocation2] sm:$0xc] %vm421_vm3, %v2313_v9  ;;  %v1152_v10 = vrot.slane %v2313_v9, 2 }
 0x91b   :  { %2047 = vmatmul.mubr.msk.f32.vlgmr.msra.gmra.mrb[14].mxu1 %vm265_vm2, %v1152_v10 }
 0x91c   :  { %2261 = vmatpush3.bf16.msra.mxu1 %v2704_v50  ;;  %2068 = vmatprep.mubr.msk.f32.mxu1 %vm2327_vm0, %v2328_v47 }
 0x91d   :  { %2262 = vmatprep.subr.bf16.mxu1 %v2326_v38 }
 0x920   :  { %2264 = vmatpush3.bf16.msra.mxu1 %v2714_v53 }
 0x921   :  { %2271 = vmatprep.subr.bf16.mxu1 %v2326_v38 }
 0x9ee   :  { %v1221_v11 = vpop.f32.mrb[14].mxu1 }
 0x9ef   :  { %v1226_v12 = vrot.slane %v1221_v11, 4  ;;  %v2048_v13 = vpop.f32.mrb[15].mxu1 }
 0x9f1   :  { %v1228_v14 = vadd.f32 %v1226_v12, %v987_v2 }
 0x9f3   :  { %2314 = vtanh.f32 %v1228_v14 }
 0x9fd   :  { %v2315_v15 = vpop.eup %2314 }
 0x9fe   :  { %1230 = vst.msk [vmem:[#allocation2] sm:$0x30] %vm502_vm4, %v2315_v15  ;;  %v1232_v16 = vrot.slane %v2315_v15, 4 }
 0xa00   :  { %2058 = vmatmul.mubr.msk.f32.vlgmr.msra.gmra.mrb[16].mxu0 %vm265_vm2, %v1232_v16 }
 0xa01   :  { %2267 = vmatpush3.bf16.msra.mxu0 %v2704_v50  ;;  %2079 = vmatprep.mubr.msk.f32.mxu0 %vm2327_vm0, %v2328_v47 }
 0xa02   :  { %2268 = vmatprep.subr.bf16.mxu0 %v2326_v38 }
 0xa05   :  { %2270 = vmatpush3.bf16.msra.mxu0 %v2714_v53 }
 0xa06   :  { %2277 = vmatprep.subr.bf16.mxu0 %v2326_v38 }
 0xad3   :  { %v1301_v17 = vpop.f32.mrb[16].mxu0 }
 0xad4   :  { %v1306_v18 = vrot.slane %v1301_v17, 2  ;;  %v2059_v19 = vpop.f32.mrb[17].mxu0 }
 0xad6   :  { %v1308_v20 = vadd.f32 %v1306_v18, %v987_v2 }
 0xad8   :  { %2316 = vtanh.f32 %v1308_v20 }
 0xae2   :  { %v2317_v21 = vpop.eup %2316 }
 0xae3   :  { %1310 = vst.msk [vmem:[#allocation2] sm:$0xc0] %vm583_vm5, %v2317_v21  ;;  %v1312_v22 = vrot.slane %v2317_v21, 6 }
 0xae5   :  { %2069 = vmatmul.mubr.msk.f32.vlgmr.msra.gmra.mrb[16].mxu1 %vm265_vm2, %v1312_v22 }
 0xae6   :  { %2273 = vmatpush3.bf16.msra.mxu1 %v2704_v50  ;;  %2090 = vmatprep.mubr.msk.f32.mxu1 %vm2327_vm0, %v2328_v47 }
 0xae7   :  { %2274 = vmatprep.subr.bf16.mxu1 %v2326_v38 }
 0xaea   :  { %2276 = vmatpush3.bf16.msra.mxu1 %v2714_v53  ;;  %v1627_v33 = vld [vmem:[#allocation2] sm:$0xff] }
 0xaeb   :  { %2284 = vmatprep.subr.bf16.mxu1 %v2283_v41 }
 0xbb8   :  { %v1381_v23 = vpop.f32.mrb[16].mxu1 }
 0xbb9   :  { %v1385_v24 = vadd.f32 %v1381_v23, %v2738_v0  ;;  %v2070_v25 = vpop.f32.mrb[17].mxu1 }
 0xbbb   :  { %2318 = vtanh.f32 %v1385_v24 }
 0xbc5   :  { %v2319_v26 = vpop.eup %2318 }
 0xbc6   :  { %1387 = vst.msk [vmem:[#allocation2 + $0x8] sm:$0x3] %vm341_vm1, %v2319_v26  ;;  %2080 = vmatmul.mubr.msk.f32.vlgmr.msra.gmra.mrb[18].mxu0 %vm265_vm2, %v2319_v26 }
 0xbc7   :  { %2279 = vmatpush3.bf16.msra.mxu0 %v2704_v50  ;;  %2101 = vmatprep.mubr.msk.f32.mxu0 %vm2327_vm0, %v2328_v47 }
 0xbc8   :  { %2280 = vmatprep.subr.bf16.mxu0 %v2326_v38 }
 0xbcb   :  { %2282 = vmatpush3.bf16.msra.mxu0 %v2714_v53 }
 0xc99   :  { %v1457_v27 = vpop.f32.mrb[18].mxu0 }
 0xc9a   :  { %v1462_v28 = vrot.slane %v1457_v27, 6  ;;  %v2081_v29 = vpop.f32.mrb[19].mxu0 }
 0xc9c   :  { %v1464_v30 = vadd.f32 %v1462_v28, %v2738_v0 }
 0xc9e   :  { %2320 = vtanh.f32 %v1464_v30 }
 0xca8   :  { %v2321_v31 = vpop.eup %2320 }
 0xca9   :  { %1466 = vst.msk [vmem:[#allocation2 + $0x8] sm:$0xc] %vm421_vm3, %v2321_v31  ;;  %v1468_v32 = vrot.slane %v2321_v31, 2 }
 0xcab   :  { %2091 = vmatmul.mubr.msk.f32.vlgmr.msra.gmra.mrb[18].mxu1 %vm265_vm2, %v1468_v32 }
 0xcac   :  { %2112 = vmatprep.mubr.msk.f32.mxu1 %vm265_vm2, %v1627_v33  ;;  %2286 = vmatpush3.bf16.msra.mxu1 %v2283_v41 }
 0xcad   :  { %2288 = vmatprep.subr.bf16.mxu1 %v2287_v44 }
 0xcb0   :  { %2290 = vmatpush3.bf16.msra.mxu1 %v2287_v44 }
 0xd7e   :  { %v1537_v47 = vpop.f32.mrb[18].mxu1 }
 0xd7f   :  { %v1542_v34 = vrot.slane %v1537_v47, 4  ;;  %v2092_v38 = vpop.f32.mrb[19].mxu1 }
 0xd81   :  { %v1544_v35 = vadd.f32 %v1542_v34, %v2738_v0 }
 0xd83   :  { %2322 = vtanh.f32 %v1544_v35 }
 0xd8d   :  { %v2323_v36 = vpop.eup %2322 }
 0xd8e   :  { %1546 = vst.msk [vmem:[#allocation2 + $0x8] sm:$0x30] %vm502_vm4, %v2323_v36  ;;  %v1548_v37 = vrot.slane %v2323_v36, 4 }
 0xd90   :  { %2102 = vmatmul.mubr.msk.f32.vlgmr.msra.gmra.mrb[20].mxu0 %vm265_vm2, %v1548_v37 }
 0xe63   :  { %v1617_v45 = vpop.f32.mrb[20].mxu0 }
 0xe64   :  { %v1622_v46 = vrot.slane %v1617_v45, 2  ;;  %v2103_v48 = vpop.f32.mrb[21].mxu0 }
 0xe66   :  { %v1624_v49 = vadd.f32 %v1622_v46, %v2738_v0 }
 0xe68   :  { %2324 = vtanh.f32 %v1624_v49 }
 0xe72   :  { %v2325_v50 = vpop.eup %2324 }
 0xe73   :  { %1626 = vst.msk [vmem:[#allocation2 + $0x8] sm:$0xc0] %vm583_vm5, %v2325_v50 }
 0xe7a   :  { %v1628_v51 = vld [vmem:[#allocation2 + $0x8] sm:$0xff] }
 0xe7b   :  { %2113 = vmatmul.mubr.msk.f32.vlgmr.msra.gmra.mrb[20].mxu1 %vm265_vm2, %v1628_v51 }
 0xf4e   :  { %v2114_v53 = vpop.f32.mrb[20].mxu1 }
 0xf4f   :  { %v1718_v54 = vadd.f32 %v2114_v53, %v1746_v52  ;;  %v1712_v55 = vpop.f32.mrb[21].mxu1 }
 0xf50   :  { %v1713_v56 = vadd.f32 %v1746_v52, %v1712_v55 }
 0xf51   :  { %1723 = vst.msk [vmem:[%s2819_s9 + $0x8] sm:$0xff] %vm1721_vm6, %v1718_v54 }
 0xf52   :  { %1722 = vst.msk [vmem:[%s2819_s9] sm:$0xff] %vm1721_vm6, %v1713_v56 }

</bundles_post_ra>
